<compile_context>
chip_gen: v7x
topology: tpu7x:2x2x1
jax: 0.10.0
libtpu: 0.0.40
codegen_flags: <defaults>
</compile_context>

<pallas_src>
import jax
import jax.numpy as jnp
from jax import lax
from jax.experimental import pallas as pl
from jax.experimental.pallas import tpu as pltpu

_MAX_TM = 2048  # keeps TM*512 f32 (+ bf16 copies) intermediates << scoped VMEM


def _round_up(x, m):
    return ((x + m - 1) // m) * m


def _choose_tiling(batch, tm_req):
    """Return (tm, n_tiles).  Guarantees tm % 8 == 0 always and tm % 128 == 0
    whenever n_tiles > 1, so both the (tm, n_labels) input block and the
    lane-dense (1, tm) output block are legal BlockSpecs."""
    tm_req = max(8, min(int(tm_req), _MAX_TM))
    b8 = _round_up(batch, 8)
    if b8 <= tm_req and batch < 256:
        # Small batch: single grid step; pipeline overhead dominates and the
        # second v7x TensorCore would not pay for itself.
        return b8, 1
    tm = _round_up(min(tm_req, b8), 128)
    n_tiles = pl.cdiv(batch, tm)
    if n_tiles == 1:
        # Keep >= 2 parallel grid steps so v7x can use both TensorCores
        # (no-op on single-TC v5e/v6e).
        n_tiles = 2
        tm = _round_up(pl.cdiv(batch, 2), 128)
    return tm, n_tiles


def _mlp_branch_kernel(x_ref, w1_ref, b1_ref, w2_ref, b2_ref,
                       w3_ref, b3_ref, w4_ref, b4_ref, o_ref):
    # Hot path: 3 bf16 MXU matmuls (f32 accumulation) + bias/ReLU on the VPU.
    x = x_ref[...]                                                   # (TM, n_labels) bf16
    h = jnp.dot(x, w1_ref[...], preferred_element_type=jnp.float32)
    h = jnp.maximum(h + b1_ref[...], 0.0).astype(jnp.bfloat16)       # (TM, 512)
    h = jnp.dot(h, w2_ref[...], preferred_element_type=jnp.float32)
    h = jnp.maximum(h + b2_ref[...], 0.0).astype(jnp.bfloat16)       # (TM, 256)
    h = jnp.dot(h, w3_ref[...], preferred_element_type=jnp.float32)
    h = jnp.maximum(h + b3_ref[...], 0.0)                            # (TM, 128) f32

    # Final Linear(128 -> 1): contract (8,128) [row 0 = real weights, rows 1-7
    # zero-padding] against (TM,128) on the feature dim -> (8, TM); row 0 is
    # the lane-dense score row.  Avoids the N=1 MXU shape and any (TM,1)->(1,TM)
    # relayout before the store.
    s8 = lax.dot_general(w4_ref[...], h, (((1,), (1,)), ((), ())),
                         preferred_element_type=jnp.float32)         # (8, TM)
    scores = s8[0:1, :] + b4_ref[0, 0]                               # (1, TM)
    o_ref[...] = scores.astype(o_ref.dtype)


def _resident(a):
    # Full-array block at a constant block index -> DMA'd once, VMEM-resident
    # across all grid steps.
    return pl.BlockSpec(a.shape, lambda i: (0, 0))


def prepare_params(params):
    """Hoist dtype casts / reshapes out of the per-call path.  `params` is the
    list of 4 (W, b) tuples with W stored (in_features, out_features)."""
    (w1, b1), (w2, b2), (w3, b3), (w4, b4) = params
    w4_pad = jnp.zeros((8, 128), jnp.float32).at[0].set(
        w4.reshape(-1).astype(jnp.float32))
    return (w1.astype(jnp.bfloat16), b1.reshape(1, -1).astype(jnp.float32),
            w2.astype(jnp.bfloat16), b2.reshape(1, -1).astype(jnp.float32),
            w3.astype(jnp.bfloat16), b3.reshape(1, -1).astype(jnp.float32),
            w4_pad, b4.reshape(1, 1).astype(jnp.float32))


def multiple_branches_discriminator(x, prepared, *, tm=1024):
    """x: (B, n_labels) f32.  prepared: output of prepare_params().
    Returns (B, 1) f32 — the concatenated scores of the single branch."""
    B, n_labels = x.shape
    w1b, b1f, w2b, b2f, w3b, b3f, w4p, b4s = prepared

    tm, n_tiles = _choose_tiling(B, tm)
    padded_b = tm * n_tiles

    x_bf = x.astype(jnp.bfloat16)
    if padded_b != B:
        x_bf = jnp.pad(x_bf, ((0, padded_b - B), (0, 0)))

    flops = 2 * padded_b * (n_labels * 512 + 512 * 256 + 256 * 128 + 128 * 8)
    bytes_accessed = (
        x_bf.size * 2
        + (w1b.size + w2b.size + w3b.size) * 2
        + (b1f.size + b2f.size + b3f.size + w4p.size + b4s.size) * 4
        + padded_b * 4
    )

    out = pl.pallas_call(
        _mlp_branch_kernel,
        out_shape=jax.ShapeDtypeStruct((1, padded_b), jnp.float32),
        grid=(n_tiles,),
        in_specs=[
            pl.BlockSpec((tm, n_labels), lambda i: (i, 0)),   # x streamed per tile
            _resident(w1b), _resident(b1f),
            _resident(w2b), _resident(b2f),
            _resident(w3b), _resident(b3f),
            _resident(w4p),
            pl.BlockSpec(memory_space=pltpu.MemorySpace.SMEM),  # b4 scalar
        ],
        out_specs=pl.BlockSpec((1, tm), lambda i: (0, i)),       # lane-dense row
        compiler_params=pltpu.CompilerParams(
            dimension_semantics=("parallel",)),
        cost_estimate=pl.CostEstimate(
            flops=flops, transcendentals=0, bytes_accessed=bytes_accessed),
    )(x_bf, w1b, b1f, w2b, b2f, w3b, b3f, w4p, b4s)

    return out[0, :B].reshape(B, 1)


def init_params(key, n_labels):
    """Deterministic init mimicking torch.nn.Linear default (U[-1/sqrt(fan_in), +]).
    Weights stored as (in_features, out_features); biases as (out_features,)."""
    dims = [n_labels, 512, 256, 128, 1]
    params = []
    for i in range(4):
        fan_in, fan_out = dims[i], dims[i + 1]
        key, kw, kb = jax.random.split(key, 3)
        bound = 1.0 / jnp.sqrt(fan_in)
        w = jax.random.uniform(kw, (fan_in, fan_out), jnp.float32, -bound, bound)
        b = jax.random.uniform(kb, (fan_out,), jnp.float32, -bound, bound)
        params.append((w, b))
    return params


def reference_forward(x, params):
    """Pure-JAX reference mirroring the kernel's bf16/f32 mixed precision."""
    (w1, b1), (w2, b2), (w3, b3), (w4, b4) = params
    h = jnp.dot(x.astype(jnp.bfloat16), w1.astype(jnp.bfloat16),
                preferred_element_type=jnp.float32)
    h = jnp.maximum(h + b1.reshape(1, -1), 0.0).astype(jnp.bfloat16)
    h = jnp.dot(h, w2.astype(jnp.bfloat16), preferred_element_type=jnp.float32)
    h = jnp.maximum(h + b2.reshape(1, -1), 0.0).astype(jnp.bfloat16)
    h = jnp.dot(h, w3.astype(jnp.bfloat16), preferred_element_type=jnp.float32)
    h = jnp.maximum(h + b3.reshape(1, -1), 0.0)
    out = h @ w4.reshape(-1, 1) + b4.reshape(1, 1)
    return out  # (B, 1), single branch concatenated on dim=1


if __name__ == "__main__":
    key = jax.random.PRNGKey(0)
    n_labels = 32
    k_x1, k_x2, k_p = jax.random.split(key, 3)

    params = init_params(k_p, n_labels)
    prepared = prepare_params(params)

    fwd = jax.jit(multiple_branches_discriminator, static_argnames=("tm",))

    # Case 1: small batch -> single grid step (grid=(1,)), rows padded 60 -> 64.
    x1 = jax.random.normal(k_x1, (60, n_labels), jnp.float32)
    out1 = jax.block_until_ready(fwd(x1, prepared, tm=1024))
    ref1 = reference_forward(x1, params)
    assert out1.shape == (60, 1), out1.shape
    assert jnp.allclose(out1, ref1, atol=1e-2, rtol=1e-2), (out1, ref1)

    # Case 2: multi-tile path -> grid=(2,), tm=128, lane-dense multi-block output.
    x2 = jax.random.normal(k_x2, (250, n_labels), jnp.float32)
    out2 = jax.block_until_ready(fwd(x2, prepared, tm=128))
    ref2 = reference_forward(x2, params)
    assert out2.shape == (250, 1), out2.shape
    assert jnp.allclose(out2, ref2, atol=1e-2, rtol=1e-2), (out2, ref2)

    print("KERNEL_OK")
</pallas_src>

<mosaic_0001>
module attributes {stable_mosaic.version = 11 : i64} {
  func.func @_mlp_branch_kernel(%arg0: i32, %arg1: memref<64x32xbf16, #tpu.memory_space<vmem>>, %arg2: memref<32x512xbf16, #tpu.memory_space<vmem>>, %arg3: memref<1x512xf32, #tpu.memory_space<vmem>>, %arg4: memref<512x256xbf16, #tpu.memory_space<vmem>>, %arg5: memref<1x256xf32, #tpu.memory_space<vmem>>, %arg6: memref<256x128xbf16, #tpu.memory_space<vmem>>, %arg7: memref<1x128xf32, #tpu.memory_space<vmem>>, %arg8: memref<8x128xf32, #tpu.memory_space<vmem>>, %arg9: memref<1x1xf32, #tpu.memory_space<smem>>, %arg10: memref<1x64xf32, #tpu.memory_space<vmem>>) attributes {dimension_semantics = [#tpu.dimension_semantics<parallel>], iteration_bounds = array<i64: 1>, scalar_prefetch = 0 : i64, scratch_operands = 0 : i64, tpu.core_type = #tpu.core_type<tc>, window_params = [{transform_indices = @transform_0, window_bounds = array<i64: 64, 32>}, {pipeline_mode = #tpu.pipeline_mode<synchronous>, transform_indices = @transform_1, window_bounds = array<i64: 32, 512>}, {pipeline_mode = #tpu.pipeline_mode<synchronous>, transform_indices = @transform_2, window_bounds = array<i64: 1, 512>}, {pipeline_mode = #tpu.pipeline_mode<synchronous>, transform_indices = @transform_3, window_bounds = array<i64: 512, 256>}, {pipeline_mode = #tpu.pipeline_mode<synchronous>, transform_indices = @transform_4, window_bounds = array<i64: 1, 256>}, {pipeline_mode = #tpu.pipeline_mode<synchronous>, transform_indices = @transform_5, window_bounds = array<i64: 256, 128>}, {pipeline_mode = #tpu.pipeline_mode<synchronous>, transform_indices = @transform_6, window_bounds = array<i64: 1, 128>}, {pipeline_mode = #tpu.pipeline_mode<synchronous>, transform_indices = @transform_7, window_bounds = array<i64: 8, 128>}, {transform_indices = @transform_8, window_bounds = array<i64: 1, 1>}, {transform_indices = @transform_9, window_bounds = array<i64: 1, 64>}]} {
    %c0 = arith.constant 0 : index
    %c0_0 = arith.constant 0 : index
    %0 = vector.load %arg1[%c0, %c0_0] : memref<64x32xbf16, #tpu.memory_space<vmem>>, vector<64x32xbf16>
    %c0_1 = arith.constant 0 : index
    %c0_2 = arith.constant 0 : index
    %1 = vector.load %arg2[%c0_1, %c0_2] : memref<32x512xbf16, #tpu.memory_space<vmem>>, vector<32x512xbf16>
    %cst = arith.constant dense<0.000000e+00> : vector<64x512xf32>
    %2 = tpu.matmul %0, %1, %cst {dimension_numbers = #tpu.dot_dimension_numbers<[1], [0], [0], [1], [0, 0, 1, 1], [], []>} : vector<64x32xbf16>, vector<32x512xbf16>, vector<64x512xf32> -> vector<64x512xf32>
    %c0_3 = arith.constant 0 : index
    %c0_4 = arith.constant 0 : index
    %3 = vector.load %arg3[%c0_3, %c0_4] : memref<1x512xf32, #tpu.memory_space<vmem>>, vector<1x512xf32>
    %4 = vector.broadcast %3 : vector<1x512xf32> to vector<64x512xf32>
    %5 = arith.addf %2, %4 : vector<64x512xf32>
    %cst_5 = arith.constant 0.000000e+00 : f32
    %6 = vector.broadcast %cst_5 : f32 to vector<64x512xf32>
    %7 = arith.maximumf %5, %6 : vector<64x512xf32>
    %8 = arith.truncf %7 : vector<64x512xf32> to vector<64x512xbf16>
    %c0_6 = arith.constant 0 : index
    %c0_7 = arith.constant 0 : index
    %9 = vector.load %arg4[%c0_6, %c0_7] : memref<512x256xbf16, #tpu.memory_space<vmem>>, vector<512x256xbf16>
    %cst_8 = arith.constant dense<0.000000e+00> : vector<64x256xf32>
    %10 = tpu.matmul %8, %9, %cst_8 {dimension_numbers = #tpu.dot_dimension_numbers<[1], [0], [0], [1], [0, 0, 1, 1], [], []>} : vector<64x512xbf16>, vector<512x256xbf16>, vector<64x256xf32> -> vector<64x256xf32>
    %c0_9 = arith.constant 0 : index
    %c0_10 = arith.constant 0 : index
    %11 = vector.load %arg5[%c0_9, %c0_10] : memref<1x256xf32, #tpu.memory_space<vmem>>, vector<1x256xf32>
    %12 = vector.broadcast %11 : vector<1x256xf32> to vector<64x256xf32>
    %13 = arith.addf %10, %12 : vector<64x256xf32>
    %cst_11 = arith.constant 0.000000e+00 : f32
    %14 = vector.broadcast %cst_11 : f32 to vector<64x256xf32>
    %15 = arith.maximumf %13, %14 : vector<64x256xf32>
    %16 = arith.truncf %15 : vector<64x256xf32> to vector<64x256xbf16>
    %c0_12 = arith.constant 0 : index
    %c0_13 = arith.constant 0 : index
    %17 = vector.load %arg6[%c0_12, %c0_13] : memref<256x128xbf16, #tpu.memory_space<vmem>>, vector<256x128xbf16>
    %cst_14 = arith.constant dense<0.000000e+00> : vector<64x128xf32>
    %18 = tpu.matmul %16, %17, %cst_14 {dimension_numbers = #tpu.dot_dimension_numbers<[1], [0], [0], [1], [0, 0, 1, 1], [], []>} : vector<64x256xbf16>, vector<256x128xbf16>, vector<64x128xf32> -> vector<64x128xf32>
    %c0_15 = arith.constant 0 : index
    %c0_16 = arith.constant 0 : index
    %19 = vector.load %arg7[%c0_15, %c0_16] : memref<1x128xf32, #tpu.memory_space<vmem>>, vector<1x128xf32>
    %20 = vector.broadcast %19 : vector<1x128xf32> to vector<64x128xf32>
    %21 = arith.addf %18, %20 : vector<64x128xf32>
    %cst_17 = arith.constant 0.000000e+00 : f32
    %22 = vector.broadcast %cst_17 : f32 to vector<64x128xf32>
    %23 = arith.maximumf %21, %22 : vector<64x128xf32>
    %c0_18 = arith.constant 0 : index
    %c0_19 = arith.constant 0 : index
    %24 = vector.load %arg8[%c0_18, %c0_19] : memref<8x128xf32, #tpu.memory_space<vmem>>, vector<8x128xf32>
    %cst_20 = arith.constant dense<0.000000e+00> : vector<8x64xf32>
    %25 = tpu.matmul %24, %23, %cst_20 {dimension_numbers = #tpu.dot_dimension_numbers<[1], [1], [0], [0], [0, 0, 1, 0], [], []>} : vector<8x128xf32>, vector<64x128xf32>, vector<8x64xf32> -> vector<8x64xf32>
    %26 = vector.extract_strided_slice %25 {offsets = [0, 0], sizes = [1, 64], strides = [1, 1]} : vector<8x64xf32> to vector<1x64xf32>
    %c0_21 = arith.constant 0 : index
    %c0_22 = arith.constant 0 : index
    %27 = memref.load %arg9[%c0_21, %c0_22] : memref<1x1xf32, #tpu.memory_space<smem>>
    %28 = vector.broadcast %27 : f32 to vector<1x64xf32>
    %29 = arith.addf %26, %28 : vector<1x64xf32>
    %c0_23 = arith.constant 0 : index
    %c0_24 = arith.constant 0 : index
    %30 = vector.load %arg10[%c0_23, %c0_24] : memref<1x64xf32, #tpu.memory_space<vmem>>, vector<1x64xf32>
    tpu.vector_store %arg10[%c0_23, %c0_24], %29 {strides = array<i32>} : memref<1x64xf32, #tpu.memory_space<vmem>>, vector<1x64xf32>,
    return
  }
  func.func @transform_0(%arg0: i32) -> (i32, i32) {
    %c0_i32 = arith.constant 0 : i32
    %c0_i32_0 = arith.constant 0 : i32
    return %arg0, %c0_i32 : i32, i32
  }
  func.func @transform_1(%arg0: i32) -> (i32, i32) {
    %c0_i32 = arith.constant 0 : i32
    %c0_i32_0 = arith.constant 0 : i32
    %c0_i32_1 = arith.constant 0 : i32
    return %c0_i32, %c0_i32_0 : i32, i32
  }
  func.func @transform_2(%arg0: i32) -> (i32, i32) {
    %c0_i32 = arith.constant 0 : i32
    %c0_i32_0 = arith.constant 0 : i32
    %c0_i32_1 = arith.constant 0 : i32
    return %c0_i32, %c0_i32_0 : i32, i32
  }
  func.func @transform_3(%arg0: i32) -> (i32, i32) {
    %c0_i32 = arith.constant 0 : i32
    %c0_i32_0 = arith.constant 0 : i32
    %c0_i32_1 = arith.constant 0 : i32
    return %c0_i32, %c0_i32_0 : i32, i32
  }
  func.func @transform_4(%arg0: i32) -> (i32, i32) {
    %c0_i32 = arith.constant 0 : i32
    %c0_i32_0 = arith.constant 0 : i32
    %c0_i32_1 = arith.constant 0 : i32
    return %c0_i32, %c0_i32_0 : i32, i32
  }
  func.func @transform_5(%arg0: i32) -> (i32, i32) {
    %c0_i32 = arith.constant 0 : i32
    %c0_i32_0 = arith.constant 0 : i32
    %c0_i32_1 = arith.constant 0 : i32
    return %c0_i32, %c0_i32_0 : i32, i32
  }
  func.func @transform_6(%arg0: i32) -> (i32, i32) {
    %c0_i32 = arith.constant 0 : i32
    %c0_i32_0 = arith.constant 0 : i32
    %c0_i32_1 = arith.constant 0 : i32
    return %c0_i32, %c0_i32_0 : i32, i32
  }
  func.func @transform_7(%arg0: i32) -> (i32, i32) {
    %c0_i32 = arith.constant 0 : i32
    %c0_i32_0 = arith.constant 0 : i32
    %c0_i32_1 = arith.constant 0 : i32
    return %c0_i32, %c0_i32_0 : i32, i32
  }
  func.func @transform_8(%arg0: i32) -> (i32, i32) {
    %c0_i32 = arith.constant 0 : i32
    %c0_i32_0 = arith.constant 0 : i32
    %c0_i32_1 = arith.constant 0 : i32
    return %c0_i32, %c0_i32_0 : i32, i32
  }
  func.func @transform_9(%arg0: i32) -> (i32, i32) {
    %c0_i32 = arith.constant 0 : i32
    %c0_i32_0 = arith.constant 0 : i32
    return %c0_i32, %arg0 : i32, i32
  }
}

</mosaic_0001>

<bundles_post_ra>
// kernel: multiple_branches_discriminator.1
= control target key start
LH: loop header
LB: loop body
LE: loop exit
PB: predicated region body
PF: predicated region fallthrough
CT: control target
= control target key end

     0   :  { %15 = vsyncpa [#allocation4], 0  ;;  %s1857_s0 = inlined_call_operand.vmem [shape: bf16[64,32], index: 0, kind: input, shape index: {}]   ;;  %s1858_s1 = inlined_call_operand.hbm [shape: bf16[32,512], index: 1, kind: input, shape index: {}]   ;;  %s1859_s2 = inlined_call_operand.vmem [shape: f32[1,512], index: 2, kind: input, shape index: {}]   ;;  %s1860_s3 = inlined_call_operand.hbm [shape: bf16[512,256], index: 3, kind: input, shape index: {}]   ;;  %s1861_s4 = inlined_call_operand.vmem [shape: f32[1,256], index: 4, kind: input, shape index: {}]   ;;  %s1862_s5 = inlined_call_operand.vmem [shape: bf16[256,128], index: 5, kind: input, shape index: {}]   ;;  %s1863_s6 = inlined_call_operand.vmem [shape: f32[1,128], index: 6, kind: input, shape index: {}]   ;;  %s1864_s7 = inlined_call_operand.vmem [shape: f32[8,128], index: 7, kind: input, shape index: {}]   ;;  %s1865_s8 = inlined_call_operand.<no memory space> [shape: f32[1,1], index: 8, kind: input, shape index: {}]   ;;  %s1866_s9 = inlined_call_operand.vmem [shape: f32[1,64], index: 9, kind: output, shape index: {}]  }
   0x1   :  { %16 = vsyncpa [#allocation6], 0  ;;  %s1622_s30 = smov [#allocation3]   ;;  %s1574_s13 = scalar_lea.hbm %s1858_s1, 1024 }
   0x2   :  { %s24_s10 = sshll.u32 %s1622_s30, 4  ;;  %p1575_p0 = scmp.ne.s32.totalorder %s1858_s1, %s1574_s13  ;;  %s25_s10 = int_to_ptr.vmem [resolvable:$true] %s24_s10 }
   0x3   :  { %p1578_p1 = scmp.lt.u32.totalorder %s1574_s13, %s1858_s1 }
   0x5   :  { %p1580_p2 = pnand %p1578_p1, %p1575_p0 }
   0x7   :  { %1583 = shalt.err (!%p1580_p2)
}
   0x8   :  { %s1584_s18 = scalar_lea.vmem %s25_s10, 1024  ;;  %p1589_p4 = scmp.lt.s32.totalorder %s25_s10, %s25_s10 }
   0x9   :  { %p1585_p3 = scmp.ne.s32.totalorder %s25_s10, %s1584_s18  ;;  %p1590_p5 = scmp.lt.s32.totalorder %s1584_s18, %s1584_s18 }
   0xb   :  { %p1591_p6 = por %p1590_p5, %p1589_p4 }
   0xd   :  { %p1592_p7 = pnand %p1591_p6, %p1585_p3 }
   0xf   :  { %1595 = shalt.err (!%p1592_p7)
}
  0x10   :  { %s1623_s19 = smov 256   ;;  %s1624_s20 = smov 16  }
  0x11   :  { %30 = dma.hbm_to_vmem [thread:$0]  %s1858_s1, 1024, %s25_s10, [#allocation4], %s1623_s19, %s1623_s19, %s1624_s20  }
  0x12   :  { %s1625_s23 = smov [#allocation5]   ;;  %s1596_s27 = scalar_lea.hbm %s1860_s3, 8192 }
  0x13   :  { %s38_s24 = sshll.u32 %s1625_s23, 4  ;;  %p1597_p8 = scmp.ne.s32.totalorder %s1860_s3, %s1596_s27  ;;  %s39_s24 = int_to_ptr.vmem [resolvable:$true] %s38_s24 }
  0x14   :  { %p1600_p9 = scmp.lt.u32.totalorder %s1596_s27, %s1860_s3 }
  0x16   :  { %p1602_p10 = pnand %p1600_p9, %p1597_p8 }
  0x18   :  { %1605 = shalt.err (!%p1602_p10)
}
  0x19   :  { %s1606_s12 = scalar_lea.vmem %s39_s24, 8192  ;;  %p1611_p12 = scmp.lt.s32.totalorder %s39_s24, %s39_s24 }
  0x1a   :  { %p1607_p11 = scmp.ne.s32.totalorder %s39_s24, %s1606_s12  ;;  %p1612_p13 = scmp.lt.s32.totalorder %s1606_s12, %s1606_s12 }
  0x1c   :  { %p1613_p0 = por %p1612_p13, %p1611_p12 }
  0x1e   :  { %p1614_p1 = pnand %p1613_p0, %p1607_p11 }
  0x20   :  { %1617 = shalt.err (!%p1614_p1)
}
  0x21   :  { %s1626_s1 = smov 128   ;;  %s1627_s10 = smov 8  }
  0x22   :  { %44 = dma.hbm_to_vmem [thread:$0]  %s1860_s3, 8192, %s39_s24, [#allocation6], %s1626_s1, %s1626_s1, %s1627_s10  }
  0x23   :  { %1618 = dma.done.wait [#allocation4], 1024  }
  0x24   :  { %1619 = vsyncadd [#allocation4], 4294966272 }
  0x25   :  { %1620 = dma.done.wait [#allocation6], 8192  }
  0x26   :  { %1621 = vsyncadd [#allocation6], 4294959104  ;;  %v1628_v0 = vmov 0   ;;  %v1446_v1 = vld [vmem:[#allocation3 + $0x4] ss:$16 sps:$4 sm:$0xff]   ;;  %vm160_vm0 = vcmask 261120  }
  0x27   :  { %205 = vmatprep.mubr.bf16.mxu0 %v1628_v0  ;;  %v1448_v2 = vld [vmem:[#allocation3] ss:$16 sps:$4 sm:$0xff]   ;;  %173 = vmatprep.subr.bf16.mxu0 %v1446_v1  ;;  %v1449_v3 = vld [vmem:[#allocation3 + $0x24] ss:$16 sps:$4 sm:$0xff]   ;;  %v1455_v5 = vld [vmem:[#allocation3 + $0xc] ss:$16 sps:$4 sm:$0xff]  }
  0x28   :  { %174 = vmatpush1.bf16.msra.mxu0 %v1448_v2  ;;  %v1451_v4 = vld [vmem:[#allocation3 + $0x20] ss:$16 sps:$4 sm:$0xff]   ;;  %v1453_v7 = vld [vmem:[#allocation3 + $0x8] ss:$16 sps:$4 sm:$0xff]   ;;  %v1460_v8 = vld [vmem:[#allocation3 + $0x2c] ss:$16 sps:$4 sm:$0xff]  }
  0x29   :  { %175 = vmatprep.subr.bf16.mxu0 %v1449_v3  ;;  %v1452_v6 = vld [vmem:[%s1857_s0] sm:$0xff]   ;;  %v1458_v11 = vld [vmem:[#allocation3 + $0x28] ss:$16 sps:$4 sm:$0xff]   ;;  %v1465_v12 = vld [vmem:[#allocation5 + $0x14] ss:$8 sps:$4 sm:$0xff]   ;;  %vm1630_vm1 = vmmov 0  }
  0x2a   :  { %v1462_v9 = vld [vmem:[#allocation5 + $0x4] ss:$8 sps:$4 sm:$0xff]   ;;  %v1464_v10 = vld [vmem:[#allocation5] ss:$8 sps:$4 sm:$0xff]   ;;  %v1467_v13 = vld [vmem:[#allocation5 + $0x10] ss:$8 sps:$4 sm:$0xff]  }
  0x2b   :  { %763 = vmatprep.subr.bf16.mxu1 %v1462_v9  ;;  %v1456_v14 = vld [vmem:[%s1857_s0 + $0x8] sm:$0xff]   ;;  %v1471_v17 = vld [vmem:[#allocation5 + $0x34] ss:$8 sps:$4 sm:$0xff]   ;;  %v1473_v19 = vld [vmem:[#allocation5 + $0x30] ss:$8 sps:$4 sm:$0xff]   ;;  %vm1215_vm2 = vcmask 516096  }
  0x2c   :  { %176 = vmatpush1.bf16.msra.mxu0 %v1451_v4  ;;  %764 = vmatpush1.bf16.msra.mxu1 %v1464_v10  ;;  %v1468_v15 = vld [vmem:[#allocation5 + $0x24] ss:$8 sps:$4 sm:$0xff]   ;;  %v1470_v16 = vld [vmem:[#allocation5 + $0x20] ss:$8 sps:$4 sm:$0xff]   ;;  %v1720_v18 = vld [vmem:[%s1857_s0 + $0x10] sm:$0xff]  }
  0x2d   :  { %246 = vmatprep.subr.bf16.mxu0 %v1455_v5  ;;  %765 = vmatprep.subr.bf16.mxu1 %v1465_v12  ;;  %v1474_v20 = vld [vmem:[#allocation5 + $0x44] ss:$8 sps:$4 sm:$0xff]   ;;  %v1476_v22 = vld [vmem:[#allocation5 + $0x40] ss:$8 sps:$4 sm:$0xff]   ;;  %v1477_v23 = vld [vmem:[#allocation5 + $0x54] ss:$8 sps:$4 sm:$0xff]  }
  0x2e   :  { %v1490_v21 = vld [vmem:[#allocation5 + $0x104] ss:$8 sps:$4 sm:$0xff]   ;;  %v1479_v24 = vld [vmem:[#allocation5 + $0x50] ss:$8 sps:$4 sm:$0xff]   ;;  %v1482_v27 = vld [vmem:[#allocation5 + $0x60] ss:$8 sps:$4 sm:$0xff]  }
  0x2f   :  { %1235 = vmatmul.mubr.msk.bf16.vlgmr.msra.gmra.mrb[0].mxu0 %vm160_vm0, %v1452_v6  ;;  %v1728_v25 = vld [vmem:[%s1857_s0 + $0x18] sm:$0xff]   ;;  %v1480_v26 = vld [vmem:[#allocation5 + $0x64] ss:$8 sps:$4 sm:$0xff]   ;;  %v1488_v31 = vld [vmem:[#allocation5 + $0x100] ss:$8 sps:$4 sm:$0xff]  }
  0x30   :  { %247 = vmatpush1.bf16.msra.mxu0 %v1453_v7  ;;  %215 = vmatprep.mubr.bf16.mxu0 %v1628_v0  ;;  %v1483_v28 = vld [vmem:[#allocation5 + $0x74] ss:$8 sps:$4 sm:$0xff]   ;;  %v1485_v29 = vld [vmem:[#allocation5 + $0x70] ss:$8 sps:$4 sm:$0xff]   ;;  %v1486_v30 = vld [vmem:[#allocation5 + $0x84] ss:$8 sps:$4 sm:$0xff]  }
  0x31   :  { %248 = vmatprep.subr.bf16.mxu0 %v1460_v8  ;;  %766 = vmatpush1.bf16.msra.mxu1 %v1467_v13  ;;  %v1496_v32 = vld [vmem:[#allocation5 + $0x114] ss:$8 sps:$4 sm:$0xff]   ;;  %v1491_v33 = vld [vmem:[#allocation5 + $0x80] ss:$8 sps:$4 sm:$0xff]   ;;  %v1494_v35 = vld [vmem:[#allocation5 + $0x110] ss:$8 sps:$4 sm:$0xff]   ;;  %v80_v13 = vlaneseq }
  0x32   :  { %767 = vmatprep.subr.bf16.mxu1 %v1468_v15  ;;  %v1492_v34 = vld [vmem:[#allocation5 + $0x94] ss:$8 sps:$4 sm:$0xff]   ;;  %v1502_v36 = vld [vmem:[#allocation5 + $0x124] ss:$8 sps:$4 sm:$0xff]   ;;  %v1497_v37 = vld [vmem:[#allocation5 + $0x90] ss:$8 sps:$4 sm:$0xff]  }
  0x33   :  { %v1498_v38 = vld [vmem:[#allocation5 + $0xa4] ss:$8 sps:$4 sm:$0xff]   ;;  %v1500_v39 = vld [vmem:[#allocation5 + $0x120] ss:$8 sps:$4 sm:$0xff]   ;;  %v1508_v40 = vld [vmem:[#allocation5 + $0x134] ss:$8 sps:$4 sm:$0xff]  }
  0x34   :  { %249 = vmatpush1.bf16.msra.mxu0 %v1458_v11  ;;  %v1503_v41 = vld [vmem:[#allocation5 + $0xa0] ss:$8 sps:$4 sm:$0xff]   ;;  %v1504_v42 = vld [vmem:[#allocation5 + $0xb4] ss:$8 sps:$4 sm:$0xff]   ;;  %v1506_v43 = vld [vmem:[#allocation5 + $0x130] ss:$8 sps:$4 sm:$0xff]  }
  0x35   :  { %768 = vmatpush1.bf16.msra.mxu1 %v1470_v16  ;;  %836 = vmatprep.subr.bf16.mxu0 %v1490_v21  ;;  %v1514_v44 = vld [vmem:[#allocation5 + $0x144] ss:$8 sps:$4 sm:$0xff]   ;;  %v1509_v45 = vld [vmem:[#allocation5 + $0xb0] ss:$8 sps:$4 sm:$0xff]   ;;  %v1512_v47 = vld [vmem:[#allocation5 + $0x140] ss:$8 sps:$4 sm:$0xff]  }
  0x36   :  { %769 = vmatprep.subr.bf16.mxu1 %v1471_v17  ;;  %v1510_v46 = vld [vmem:[#allocation5 + $0xc4] ss:$8 sps:$4 sm:$0xff]   ;;  %v1520_v48 = vld [vmem:[#allocation5 + $0x154] ss:$8 sps:$4 sm:$0xff]   ;;  %v1515_v49 = vld [vmem:[#allocation5 + $0xc0] ss:$8 sps:$4 sm:$0xff]  }
  0x37   :  { %1236 = vmatmul.mubr.msk.bf16.gmra.mrb[4].mxu0 %vm160_vm0, %v1456_v14  ;;  %v1516_v50 = vld [vmem:[#allocation5 + $0xd4] ss:$8 sps:$4 sm:$0xff]   ;;  %v1518_v51 = vld [vmem:[#allocation5 + $0x150] ss:$8 sps:$4 sm:$0xff]   ;;  %v1522_v53 = vld [vmem:[#allocation5 + $0xe4] ss:$8 sps:$4 sm:$0xff]  }
  0x38   :  { %225 = vmatprep.mubr.bf16.mxu0 %v1628_v0  ;;  %v1521_v52 = vld [vmem:[#allocation5 + $0xd0] ss:$8 sps:$4 sm:$0xff]   ;;  %v1526_v54 = vld [vmem:[#allocation5 + $0x164] ss:$8 sps:$4 sm:$0xff]   ;;  %v1524_v55 = vld [vmem:[#allocation5 + $0x160] ss:$8 sps:$4 sm:$0xff]  }
  0x39   :  { %770 = vmatpush1.bf16.msra.mxu1 %v1473_v19  ;;  %v1527_v56 = vld [vmem:[#allocation5 + $0xe0] ss:$8 sps:$4 sm:$0xff]   ;;  %v1528_v57 = vld [vmem:[#allocation5 + $0xf4] ss:$8 sps:$4 sm:$0xff]   ;;  %v1530_v59 = vld [vmem:[#allocation5 + $0x170] ss:$8 sps:$4 sm:$0xff]  }
  0x3a   :  { %771 = vmatprep.subr.bf16.mxu1 %v1474_v20  ;;  %v1532_v58 = vld [vmem:[#allocation5 + $0x174] ss:$8 sps:$4 sm:$0xff]   ;;  %v1533_v60 = vld [vmem:[#allocation5 + $0xf0] ss:$8 sps:$4 sm:$0xff]   ;;  %v1536_v61 = vld [vmem:[#allocation5 + $0x184] ss:$8 sps:$4 sm:$0xff]  }
  0x3b   :  { %v1534_v62 = vld [vmem:[#allocation5 + $0x180] ss:$8 sps:$4 sm:$0xff]   ;;  %v1539_v63 = vld [vmem:[#allocation5 + $0x194] ss:$8 sps:$4 sm:$0xff]   ;;  %v1542_v1 = vld [vmem:[#allocation5 + $0x1a4] ss:$8 sps:$4 sm:$0xff]  }
  0x3c   :  { %v1540_v2 = vld [vmem:[#allocation5 + $0x1a0] ss:$8 sps:$4 sm:$0xff]   ;;  %v1545_v3 = vld [vmem:[#allocation5 + $0x1b4] ss:$8 sps:$4 sm:$0xff]   ;;  %v1543_v4 = vld [vmem:[#allocation5 + $0x1b0] ss:$8 sps:$4 sm:$0xff]  }
  0x3d   :  { %772 = vmatpush1.bf16.msra.mxu1 %v1476_v22  ;;  %v1548_v5 = vld [vmem:[#allocation5 + $0x1c4] ss:$8 sps:$4 sm:$0xff]   ;;  %v1551_v7 = vld [vmem:[#allocation5 + $0x1d4] ss:$8 sps:$4 sm:$0xff]   ;;  %v1549_v8 = vld [vmem:[#allocation5 + $0x1d0] ss:$8 sps:$4 sm:$0xff]  }
  0x3e   :  { %773 = vmatprep.subr.bf16.mxu1 %v1477_v23  ;;  %v1554_v9 = vld [vmem:[#allocation5 + $0x1e4] ss:$8 sps:$4 sm:$0xff]   ;;  %v1552_v10 = vld [vmem:[#allocation5 + $0x1e0] ss:$8 sps:$4 sm:$0xff]   ;;  %v1557_v11 = vld [vmem:[#allocation5 + $0x1f4] ss:$8 sps:$4 sm:$0xff]  }
  0x3f   :  { %1237 = vmatmul.mubr.msk.bf16.gmra.mrb[8].mxu0 %vm160_vm0, %v1720_v18  ;;  %v1555_v12 = vld [vmem:[#allocation5 + $0x1f0] ss:$8 sps:$4 sm:$0xff]   ;;  %v1748_v16 = vld [vmem:[%s1859_s2] sm:$0xf] }
  0x40   :  { %235 = vmatprep.mubr.bf16.mxu0 %v1628_v0 }
  0x41   :  { %774 = vmatpush1.bf16.msra.mxu1 %v1479_v24 }
  0x42   :  { %775 = vmatprep.subr.bf16.mxu1 %v1480_v26 }
  0x45   :  { %776 = vmatpush1.bf16.msra.mxu1 %v1482_v27 }
  0x46   :  { %777 = vmatprep.subr.bf16.mxu1 %v1483_v28 }
  0x47   :  { %1238 = vmatmul.mubr.msk.bf16.gmra.mrb[12].mxu0 %vm160_vm0, %v1728_v25 }
  0x48   :  { %278 = vmatprep.mubr.bf16.mxu0 %v1628_v0 }
  0x49   :  { %778 = vmatpush1.bf16.msra.mxu1 %v1485_v29 }
  0x4a   :  { %779 = vmatprep.subr.bf16.mxu1 %v1486_v30 }
  0x4d   :  { %780 = vmatpush1.bf16.msra.mxu1 %v1491_v33 }
  0x4e   :  { %781 = vmatprep.subr.bf16.mxu1 %v1492_v34 }
  0x4f   :  { %1239 = vmatmul.mubr.msk.bf16.vlgmr.msra.gmra.mrb[16].mxu0 %vm160_vm0, %v1452_v6  ;;  %v1546_v6 = vld [vmem:[#allocation5 + $0x1c0] ss:$8 sps:$4 sm:$0xff]  }
  0x50   :  { %288 = vmatprep.mubr.bf16.mxu0 %v1628_v0  ;;  %837 = vmatpush1.bf16.msra.mxu0 %v1488_v31 }
  0x51   :  { %838 = vmatprep.subr.bf16.mxu0 %v1496_v32  ;;  %782 = vmatpush1.bf16.msra.mxu1 %v1497_v37 }
  0x52   :  { %783 = vmatprep.subr.bf16.mxu1 %v1498_v38 }
  0x54   :  { %839 = vmatpush1.bf16.msra.mxu0 %v1494_v35 }
  0x55   :  { %840 = vmatprep.subr.bf16.mxu0 %v1502_v36  ;;  %784 = vmatpush1.bf16.msra.mxu1 %v1503_v41 }
  0x56   :  { %785 = vmatprep.subr.bf16.mxu1 %v1504_v42 }
  0x57   :  { %1240 = vmatmul.mubr.msk.bf16.gmra.mrb[20].mxu0 %vm160_vm0, %v1456_v14  ;;  %v1742_v14 = vshrl.u32 %v80_v13, 7 }
  0x58   :  { %298 = vmatprep.mubr.bf16.mxu0 %v1628_v0  ;;  %841 = vmatpush1.bf16.msra.mxu0 %v1500_v39 }
  0x59   :  { %842 = vmatprep.subr.bf16.mxu0 %v1508_v40  ;;  %786 = vmatpush1.bf16.msra.mxu1 %v1509_v45  ;;  %v82_v15 = vsub.s32 0, %v1742_v14  ;;  %v86_v17 = vsub.s32 1, %v1742_v14 }
  0x5a   :  { %787 = vmatprep.subr.bf16.mxu1 %v1510_v46 }
  0x5b   :  { %v87_v19 = vrot.slane %v1748_v16, %v86_v17 }
  0x5c   :  { %843 = vmatpush1.bf16.msra.mxu0 %v1506_v43 }
  0x5d   :  { %844 = vmatprep.subr.bf16.mxu0 %v1514_v44  ;;  %788 = vmatpush1.bf16.msra.mxu1 %v1515_v49 }
  0x5e   :  { %789 = vmatprep.subr.bf16.mxu1 %v1516_v50 }
  0x5f   :  { %1241 = vmatmul.mubr.msk.bf16.gmra.mrb[24].mxu0 %vm160_vm0, %v1720_v18  ;;  %v83_v18 = vrot.slane %v1748_v16, %v82_v15 }
  0x60   :  { %308 = vmatprep.mubr.bf16.mxu0 %v1628_v0  ;;  %845 = vmatpush1.bf16.msra.mxu0 %v1512_v47  ;;  %v1537_v0 = vld [vmem:[#allocation5 + $0x190] ss:$8 sps:$4 sm:$0xff]  }
  0x61   :  { %846 = vmatprep.subr.bf16.mxu0 %v1520_v48  ;;  %790 = vmatpush1.bf16.msra.mxu1 %v1521_v52 }
  0x62   :  { %791 = vmatprep.subr.bf16.mxu1 %v1522_v53 }
  0x64   :  { %847 = vmatpush1.bf16.msra.mxu0 %v1518_v51 }
  0x65   :  { %848 = vmatprep.subr.bf16.mxu0 %v1526_v54  ;;  %792 = vmatpush1.bf16.msra.mxu1 %v1527_v56 }
  0x66   :  { %793 = vmatprep.subr.bf16.mxu1 %v1528_v57 }
  0x67   :  { %1242 = vmatmul.mubr.msk.bf16.gmra.mrb[28].mxu0 %vm160_vm0, %v1728_v25 }
  0x68   :  { %849 = vmatpush1.bf16.msra.mxu0 %v1524_v55 }
  0x69   :  { %850 = vmatprep.subr.bf16.mxu0 %v1532_v58  ;;  %794 = vmatpush1.bf16.msra.mxu1 %v1533_v60 }
  0x6c   :  { %851 = vmatpush1.bf16.msra.mxu0 %v1530_v59 }
  0x6d   :  { %852 = vmatprep.subr.bf16.mxu0 %v1536_v61 }
  0x70   :  { %853 = vmatpush1.bf16.msra.mxu0 %v1534_v62 }
  0x71   :  { %854 = vmatprep.subr.bf16.mxu0 %v1539_v63 }
  0x74   :  { %855 = vmatpush1.bf16.msra.mxu0 %v1537_v0 }
  0x75   :  { %856 = vmatprep.subr.bf16.mxu0 %v1542_v1  ;;  %v90_v1 = vsub.s32 2, %v1742_v14 }
  0x78   :  { %857 = vmatpush1.bf16.msra.mxu0 %v1540_v2 }
  0x79   :  { %858 = vmatprep.subr.bf16.mxu0 %v1545_v3 }
  0x7c   :  { %859 = vmatpush1.bf16.msra.mxu0 %v1543_v4  ;;  %v94_v4 = vsub.s32 3, %v1742_v14 }
  0x7d   :  { %860 = vmatprep.subr.bf16.mxu0 %v1548_v5 }
  0x7e   :  { %v95_v13 = vrot.slane %v1748_v16, %v94_v4 }
  0x80   :  { %861 = vmatpush1.bf16.msra.mxu0 %v1546_v6 }
  0x81   :  { %862 = vmatprep.subr.bf16.mxu0 %v1551_v7 }
  0x84   :  { %863 = vmatpush1.bf16.msra.mxu0 %v1549_v8 }
  0x85   :  { %864 = vmatprep.subr.bf16.mxu0 %v1554_v9 }
  0x88   :  { %865 = vmatpush1.bf16.msra.mxu0 %v1552_v10  ;;  %v91_v10 = vrot.slane %v1748_v16, %v90_v1 }
  0x89   :  { %866 = vmatprep.subr.bf16.mxu0 %v1557_v11 }
  0x8c   :  { %867 = vmatpush1.bf16.msra.mxu0 %v1555_v12 }
 0x102   :  { %v207_v20 = vpop.f32.mrb[0].mxu0 }
 0x103   :  { %v208_v21 = vadd.f32 %v207_v20, %v83_v18  ;;  %v209_v22 = vpop.f32.mrb[1].mxu0 }
 0x104   :  { %v210_v23 = vadd.f32 %v209_v22, %v87_v19  ;;  %v211_v24 = vpop.f32.mrb[2].mxu0 }
 0x105   :  { %v212_v25 = vadd.f32 %v211_v24, %v83_v18  ;;  %v213_v26 = vpop.f32.mrb[3].mxu0  ;;  %v319_v28 = vmax.f32 %v208_v21, 0.0 }
 0x106   :  { %v214_v27 = vadd.f32 %v213_v26, %v87_v19  ;;  %v320_v30 = vmax.f32 %v210_v23, 0.0 }
 0x107   :  { %v323_v29 = vmax.f32 %v212_v25, 0.0 }
 0x108   :  { %v324_v31 = vmax.f32 %v214_v27, 0.0 }
 0x109   :  { %v351_v32 = vpack.c.bf16 %v323_v29, %v319_v28 }
 0x10a   :  { %v217_v33 = vpop.f32.mrb[4].mxu0  ;;  %v352_v34 = vpack.c.bf16 %v324_v31, %v320_v30 }
 0x10b   :  { %v218_v35 = vadd.f32 %v217_v33, %v83_v18  ;;  %v219_v36 = vpop.f32.mrb[5].mxu0 }
 0x10c   :  { %v220_v37 = vadd.f32 %v219_v36, %v87_v19  ;;  %v221_v38 = vpop.f32.mrb[6].mxu0  ;;  %795 = vmatprep.mubr.bf16.mxu1 %v352_v34 }
 0x10d   :  { %v222_v39 = vadd.f32 %v221_v38, %v83_v18  ;;  %v223_v40 = vpop.f32.mrb[7].mxu0  ;;  %796 = vmatmul.mubr.bf16.vlgmr.msra.gmra.mrb[0].mxu1 %v351_v32  ;;  %v327_v42 = vmax.f32 %v218_v35, 0.0 }
 0x10e   :  { %v224_v41 = vadd.f32 %v223_v40, %v87_v19  ;;  %v328_v44 = vmax.f32 %v220_v37, 0.0 }
 0x10f   :  { %v331_v43 = vmax.f32 %v222_v39, 0.0 }
 0x110   :  { %v332_v45 = vmax.f32 %v224_v41, 0.0 }
 0x111   :  { %v355_v46 = vpack.c.bf16 %v331_v43, %v327_v42 }
 0x112   :  { %v356_v47 = vpack.c.bf16 %v332_v45, %v328_v44  ;;  %v227_v48 = vpop.f32.mrb[8].mxu0 }
 0x113   :  { %v228_v49 = vadd.f32 %v227_v48, %v83_v18  ;;  %v229_v50 = vpop.f32.mrb[9].mxu0 }
 0x114   :  { %v230_v51 = vadd.f32 %v229_v50, %v87_v19  ;;  %v231_v52 = vpop.f32.mrb[10].mxu0  ;;  %805 = vmatprep.mubr.bf16.mxu1 %v356_v47 }
 0x115   :  { %v232_v53 = vadd.f32 %v231_v52, %v83_v18  ;;  %v233_v54 = vpop.f32.mrb[11].mxu0  ;;  %806 = vmatmul.mubr.bf16.gmra.mrb[4].mxu1 %v355_v46  ;;  %v335_v56 = vmax.f32 %v228_v49, 0.0 }
 0x116   :  { %v234_v55 = vadd.f32 %v233_v54, %v87_v19  ;;  %v336_v58 = vmax.f32 %v230_v51, 0.0 }
 0x117   :  { %v339_v57 = vmax.f32 %v232_v53, 0.0 }
 0x118   :  { %v340_v59 = vmax.f32 %v234_v55, 0.0 }
 0x119   :  { %v359_v60 = vpack.c.bf16 %v339_v57, %v335_v56 }
 0x11a   :  { %v360_v61 = vpack.c.bf16 %v340_v59, %v336_v58  ;;  %v237_v62 = vpop.f32.mrb[12].mxu0 }
 0x11b   :  { %v238_v63 = vadd.f32 %v237_v62, %v83_v18  ;;  %v239_v0 = vpop.f32.mrb[13].mxu0 }
 0x11c   :  { %v240_v2 = vadd.f32 %v239_v0, %v87_v19  ;;  %v241_v3 = vpop.f32.mrb[14].mxu0  ;;  %815 = vmatprep.mubr.bf16.mxu1 %v360_v61 }
 0x11d   :  { %v242_v5 = vadd.f32 %v241_v3, %v83_v18  ;;  %v243_v6 = vpop.f32.mrb[15].mxu0  ;;  %816 = vmatmul.mubr.bf16.gmra.mrb[8].mxu1 %v359_v60  ;;  %v343_v8 = vmax.f32 %v238_v63, 0.0 }
 0x11e   :  { %v244_v7 = vadd.f32 %v243_v6, %v87_v19  ;;  %v344_v11 = vmax.f32 %v240_v2, 0.0 }
 0x11f   :  { %v347_v9 = vmax.f32 %v242_v5, 0.0 }
 0x120   :  { %v348_v12 = vmax.f32 %v244_v7, 0.0 }
 0x121   :  { %v363_v20 = vpack.c.bf16 %v347_v9, %v343_v8 }
 0x122   :  { %v364_v21 = vpack.c.bf16 %v348_v12, %v344_v11  ;;  %v280_v22 = vpop.f32.mrb[16].mxu0  ;;  %v1558_v12 = vld [vmem:[%s1862_s5 + $0x40] sm:$0xff]  }
 0x123   :  { %v281_v23 = vadd.f32 %v280_v22, %v91_v10  ;;  %v282_v24 = vpop.f32.mrb[17].mxu0  ;;  %1324 = vmatprep.subr.bf16.mxu1 %v1558_v12  ;;  %v1563_v22 = vld [vmem:[%s1862_s5 + $0x10] sm:$0xff]  }
 0x124   :  { %v283_v25 = vadd.f32 %v282_v24, %v95_v13  ;;  %v284_v26 = vpop.f32.mrb[18].mxu0  ;;  %825 = vmatprep.mubr.bf16.mxu1 %v364_v21  ;;  %v1562_v21 = vld [vmem:[%s1862_s5 + $0x50] sm:$0xff]   ;;  %v1565_v24 = vld [vmem:[%s1862_s5 + $0x18] sm:$0xff]  }
 0x125   :  { %v285_v18 = vadd.f32 %v284_v26, %v91_v10  ;;  %v286_v27 = vpop.f32.mrb[19].mxu0  ;;  %826 = vmatmul.mubr.bf16.gmra.mrb[12].mxu1 %v363_v20  ;;  %v321_v28 = vmax.f32 %v281_v23, 0.0  ;;  %v1559_v20 = vld [vmem:[%s1862_s5] sm:$0xff]   ;;  %v1564_v23 = vld [vmem:[%s1862_s5 + $0x58] sm:$0xff]  }
 0x126   :  { %v287_v19 = vadd.f32 %v286_v27, %v95_v13  ;;  %v322_v30 = vmax.f32 %v283_v25, 0.0  ;;  %1325 = vmatpush3.bf16.msra.mxu1 %v1559_v20  ;;  %v1566_v25 = vld [vmem:[%s1862_s5 + $0x60] sm:$0xff]   ;;  %v1569_v27 = vld [vmem:[%s1862_s5 + $0x28] sm:$0xff]  }
 0x127   :  { %v325_v29 = vmax.f32 %v285_v18, 0.0  ;;  %v1567_v26 = vld [vmem:[%s1862_s5 + $0x20] sm:$0xff]   ;;  %v1568_v18 = vld [vmem:[%s1862_s5 + $0x68] sm:$0xff]  }
 0x128   :  { %v326_v31 = vmax.f32 %v287_v19, 0.0  ;;  %v1570_v19 = vld [vmem:[%s1862_s5 + $0x70] sm:$0xff]  }
 0x129   :  { %v353_v32 = vpack.c.bf16 %v325_v29, %v321_v28  ;;  %v1571_v28 = vld [vmem:[%s1862_s5 + $0x30] sm:$0xff]   ;;  %v1572_v29 = vld [vmem:[%s1862_s5 + $0x78] sm:$0xff]  }
 0x12a   :  { %v354_v33 = vpack.c.bf16 %v326_v31, %v322_v30  ;;  %v290_v34 = vpop.f32.mrb[20].mxu0  ;;  %v1573_v30 = vld [vmem:[%s1862_s5 + $0x38] sm:$0xff]  }
 0x12b   :  { %v291_v16 = vadd.f32 %v290_v34, %v91_v10  ;;  %v292_v35 = vpop.f32.mrb[21].mxu0 }
 0x12c   :  { %v293_v36 = vadd.f32 %v292_v35, %v95_v13  ;;  %v294_v37 = vpop.f32.mrb[22].mxu0  ;;  %868 = vmatprep.mubr.bf16.mxu0 %v354_v33 }
 0x12d   :  { %v295_v38 = vadd.f32 %v294_v37, %v91_v10  ;;  %v296_v39 = vpop.f32.mrb[23].mxu0  ;;  %869 = vmatmul.mubr.bf16.vlgmr.msra.gmra.mrb[32].mxu0 %v353_v32  ;;  %v329_v41 = vmax.f32 %v291_v16, 0.0 }
 0x12e   :  { %v297_v40 = vadd.f32 %v296_v39, %v95_v13  ;;  %v330_v43 = vmax.f32 %v293_v36, 0.0 }
 0x12f   :  { %v333_v42 = vmax.f32 %v295_v38, 0.0 }
 0x130   :  { %v334_v44 = vmax.f32 %v297_v40, 0.0 }
 0x131   :  { %v357_v45 = vpack.c.bf16 %v333_v42, %v329_v41  ;;  %v431_v42 = vld [vmem:[%s1861_s4] sm:$0x3] }
 0x132   :  { %v358_v46 = vpack.c.bf16 %v334_v44, %v330_v43  ;;  %v300_v47 = vpop.f32.mrb[24].mxu0 }
 0x133   :  { %v301_v48 = vadd.f32 %v300_v47, %v91_v10  ;;  %v302_v49 = vpop.f32.mrb[25].mxu0 }
 0x134   :  { %v303_v50 = vadd.f32 %v302_v49, %v95_v13  ;;  %v304_v51 = vpop.f32.mrb[26].mxu0  ;;  %878 = vmatprep.mubr.bf16.mxu0 %v358_v46  ;;  %v1818_v46 = vrot.slane %v431_v42, %v82_v15 }
 0x135   :  { %v305_v52 = vadd.f32 %v304_v51, %v91_v10  ;;  %v306_v53 = vpop.f32.mrb[27].mxu0  ;;  %879 = vmatmul.mubr.bf16.gmra.mrb[36].mxu0 %v357_v45  ;;  %v337_v55 = vmax.f32 %v301_v48, 0.0  ;;  %v1824_v48 = vrot.slane %v431_v42, %v86_v17 }
 0x136   :  { %v307_v54 = vadd.f32 %v306_v53, %v95_v13  ;;  %v338_v57 = vmax.f32 %v303_v50, 0.0 }
 0x137   :  { %v341_v56 = vmax.f32 %v305_v52, 0.0 }
 0x138   :  { %v342_v58 = vmax.f32 %v307_v54, 0.0 }
 0x139   :  { %v361_v59 = vpack.c.bf16 %v341_v56, %v337_v55 }
 0x13a   :  { %v362_v60 = vpack.c.bf16 %v342_v58, %v338_v57  ;;  %v310_v61 = vpop.f32.mrb[28].mxu0 }
 0x13b   :  { %v311_v62 = vadd.f32 %v310_v61, %v91_v10  ;;  %v312_v63 = vpop.f32.mrb[29].mxu0 }
 0x13c   :  { %v313_v0 = vadd.f32 %v312_v63, %v95_v13  ;;  %v314_v1 = vpop.f32.mrb[30].mxu0  ;;  %888 = vmatprep.mubr.bf16.mxu0 %v362_v60 }
 0x13d   :  { %v315_v2 = vadd.f32 %v314_v1, %v91_v10  ;;  %v316_v3 = vpop.f32.mrb[31].mxu0  ;;  %889 = vmatmul.mubr.bf16.gmra.mrb[40].mxu0 %v361_v59  ;;  %v345_v5 = vmax.f32 %v311_v62, 0.0  ;;  %v1560_v10 = vld [vmem:[%s1862_s5 + $0x48] sm:$0xff]  }
 0x13e   :  { %v317_v4 = vadd.f32 %v316_v3, %v95_v13  ;;  %v346_v7 = vmax.f32 %v313_v0, 0.0  ;;  %1326 = vmatprep.subr.bf16.mxu1 %v1560_v10  ;;  %v1561_v13 = vld [vmem:[%s1862_s5 + $0x8] sm:$0xff]  }
 0x13f   :  { %v349_v6 = vmax.f32 %v315_v2, 0.0  ;;  %1327 = vmatpush3.bf16.msra.mxu1 %v1561_v13 }
 0x140   :  { %v350_v8 = vmax.f32 %v317_v4, 0.0  ;;  %1328 = vmatprep.subr.bf16.mxu1 %v1562_v21 }
 0x141   :  { %v365_v9 = vpack.c.bf16 %v349_v6, %v345_v5 }
 0x142   :  { %v366_v11 = vpack.c.bf16 %v350_v8, %v346_v7 }
 0x143   :  { %1329 = vmatpush3.bf16.msra.mxu1 %v1563_v22 }
 0x144   :  { %898 = vmatprep.mubr.bf16.mxu0 %v366_v11  ;;  %1330 = vmatprep.subr.bf16.mxu1 %v1564_v23 }
 0x145   :  { %899 = vmatmul.mubr.bf16.gmra.mrb[44].mxu0 %v365_v9 }
 0x147   :  { %1331 = vmatpush3.bf16.msra.mxu1 %v1565_v24 }
 0x148   :  { %1332 = vmatprep.subr.bf16.mxu1 %v1566_v25 }
 0x14b   :  { %1333 = vmatpush3.bf16.msra.mxu1 %v1567_v26 }
 0x14c   :  { %1334 = vmatprep.subr.bf16.mxu1 %v1568_v18 }
 0x14f   :  { %1335 = vmatpush3.bf16.msra.mxu1 %v1569_v27 }
 0x150   :  { %1336 = vmatprep.subr.bf16.mxu1 %v1570_v19 }
 0x153   :  { %1337 = vmatpush3.bf16.msra.mxu1 %v1571_v28 }
 0x154   :  { %1338 = vmatprep.subr.bf16.mxu1 %v1572_v29 }
 0x157   :  { %1339 = vmatpush3.bf16.msra.mxu1 %v1573_v30 }
 0x1e0   :  { %v797_v31 = vpop.f32.mrb[0].mxu1 }
 0x1e1   :  { %v799_v32 = vpop.f32.mrb[1].mxu1  ;;  %v798_v49 = vadd.f32 %v797_v31, %v1818_v46 }
 0x1e2   :  { %v801_v33 = vpop.f32.mrb[2].mxu1  ;;  %v800_v50 = vadd.f32 %v799_v32, %v1824_v48 }
 0x1e3   :  { %v803_v34 = vpop.f32.mrb[3].mxu1  ;;  %v802_v52 = vadd.f32 %v801_v33, %v1818_v46 }
 0x1e4   :  { %v804_v55 = vadd.f32 %v803_v34, %v1824_v48 }
 0x1e8   :  { %v807_v16 = vpop.f32.mrb[4].mxu1 }
 0x1e9   :  { %v809_v35 = vpop.f32.mrb[5].mxu1  ;;  %v808_v62 = vadd.f32 %v807_v16, %v1818_v46 }
 0x1ea   :  { %v811_v36 = vpop.f32.mrb[6].mxu1  ;;  %v810_v0 = vadd.f32 %v809_v35, %v1824_v48 }
 0x1eb   :  { %v813_v37 = vpop.f32.mrb[7].mxu1  ;;  %v812_v3 = vadd.f32 %v811_v36, %v1818_v46 }
 0x1ec   :  { %v814_v6 = vadd.f32 %v813_v37, %v1824_v48 }
 0x1f0   :  { %v817_v38 = vpop.f32.mrb[8].mxu1 }
 0x1f1   :  { %v819_v39 = vpop.f32.mrb[9].mxu1  ;;  %v818_v22 = vadd.f32 %v817_v38, %v1818_v46 }
 0x1f2   :  { %v821_v40 = vpop.f32.mrb[10].mxu1  ;;  %v820_v24 = vadd.f32 %v819_v39, %v1824_v48 }
 0x1f3   :  { %v823_v41 = vpop.f32.mrb[11].mxu1  ;;  %v822_v18 = vadd.f32 %v821_v40, %v1818_v46 }
 0x1f4   :  { %v824_v28 = vadd.f32 %v823_v41, %v1824_v48 }
 0x1f8   :  { %v827_v43 = vpop.f32.mrb[12].mxu1 }
 0x1f9   :  { %v1812_v44 = vpop.f32.mrb[13].mxu1  ;;  %v828_v37 = vadd.f32 %v827_v43, %v1818_v46 }
 0x1fa   :  { %v1814_v45 = vpop.f32.mrb[14].mxu1  ;;  %v830_v39 = vadd.f32 %v1812_v44, %v1824_v48 }
 0x1fb   :  { %v1820_v47 = vpop.f32.mrb[15].mxu1  ;;  %v832_v41 = vadd.f32 %v1814_v45, %v1818_v46  ;;  %v1629_v45 = vmov 0.0|0.0   ;;  %v1631_v46 = vmov 0.0  }
 0x1fc   :  { %1392 = vmatprep.subr.bf16.mxu1 %v1629_v45 }
 0x200   :  { %v870_v51 = vpop.f32.mrb[32].mxu0 }
 0x201   :  { %v871_v53 = vadd.f32 %v870_v51, %v798_v49  ;;  %v872_v54 = vpop.f32.mrb[33].mxu0  ;;  %v834_v51 = vadd.f32 %v1820_v47, %v1824_v48  ;;  %v1307_v48 = vld [vmem:[%s1863_s6] ss:$0 sm:$0xff] }
 0x202   :  { %v873_v56 = vadd.f32 %v872_v54, %v800_v50  ;;  %v874_v15 = vpop.f32.mrb[34].mxu0 }
 0x203   :  { %v875_v57 = vadd.f32 %v874_v15, %v802_v52  ;;  %v876_v58 = vpop.f32.mrb[35].mxu0  ;;  %v909_v60 = vmax.f32 %v871_v53, 0.0 }
 0x204   :  { %v877_v59 = vadd.f32 %v876_v58, %v804_v55  ;;  %v910_v17 = vmax.f32 %v873_v56, 0.0 }
 0x205   :  { %v911_v14 = vmax.f32 %v875_v57, 0.0 }
 0x206   :  { %v912_v61 = vmax.f32 %v877_v59, 0.0 }
 0x207   :  { %v925_v63 = vpack.c.bf16 %v911_v14, %v909_v60 }
 0x208   :  { %v926_v1 = vpack.c.bf16 %v912_v61, %v910_v17  ;;  %v880_v2 = vpop.f32.mrb[36].mxu0 }
 0x209   :  { %v881_v4 = vadd.f32 %v880_v2, %v808_v62  ;;  %v882_v5 = vpop.f32.mrb[37].mxu0 }
 0x20a   :  { %v883_v7 = vadd.f32 %v882_v5, %v810_v0  ;;  %v884_v8 = vpop.f32.mrb[38].mxu0  ;;  %1100 = vmatprep.mubr.bf16.mxu1 %v926_v1 }
 0x20b   :  { %v885_v9 = vadd.f32 %v884_v8, %v812_v3  ;;  %v886_v11 = vpop.f32.mrb[39].mxu0  ;;  %1101 = vmatmul.mubr.bf16.vlgmr.msra.gmra.mrb[16].mxu1 %v925_v63  ;;  %v913_v20 = vmax.f32 %v881_v4, 0.0 }
 0x20c   :  { %v887_v12 = vadd.f32 %v886_v11, %v814_v6  ;;  %v914_v13 = vmax.f32 %v883_v7, 0.0 }
 0x20d   :  { %v915_v10 = vmax.f32 %v885_v9, 0.0 }
 0x20e   :  { %v916_v21 = vmax.f32 %v887_v12, 0.0 }
 0x20f   :  { %v927_v23 = vpack.c.bf16 %v915_v10, %v913_v20 }
 0x210   :  { %v928_v25 = vpack.c.bf16 %v916_v21, %v914_v13  ;;  %v890_v26 = vpop.f32.mrb[40].mxu0 }
 0x211   :  { %v891_v27 = vadd.f32 %v890_v26, %v818_v22  ;;  %v892_v19 = vpop.f32.mrb[41].mxu0 }
 0x212   :  { %v893_v29 = vadd.f32 %v892_v19, %v820_v24  ;;  %v894_v30 = vpop.f32.mrb[42].mxu0  ;;  %1108 = vmatprep.mubr.bf16.mxu1 %v928_v25 }
 0x213   :  { %v895_v31 = vadd.f32 %v894_v30, %v822_v18  ;;  %v896_v32 = vpop.f32.mrb[43].mxu0  ;;  %1109 = vmatmul.mubr.bf16.gmra.mrb[20].mxu1 %v927_v23  ;;  %v917_v34 = vmax.f32 %v891_v27, 0.0 }
 0x214   :  { %v897_v33 = vadd.f32 %v896_v32, %v824_v28  ;;  %v918_v35 = vmax.f32 %v893_v29, 0.0 }
 0x215   :  { %v919_v16 = vmax.f32 %v895_v31, 0.0 }
 0x216   :  { %v920_v36 = vmax.f32 %v897_v33, 0.0 }
 0x217   :  { %v929_v38 = vpack.c.bf16 %v919_v16, %v917_v34 }
 0x218   :  { %v930_v40 = vpack.c.bf16 %v920_v36, %v918_v35  ;;  %v900_v42 = vpop.f32.mrb[44].mxu0 }
 0x219   :  { %v901_v49 = vadd.f32 %v900_v42, %v828_v37  ;;  %v902_v50 = vpop.f32.mrb[45].mxu0  ;;  %v1213_v42 = vstv %s1865_s8 }
 0x21a   :  { %v903_v52 = vadd.f32 %v902_v50, %v830_v39  ;;  %v904_v53 = vpop.f32.mrb[46].mxu0  ;;  %1116 = vmatprep.mubr.bf16.mxu1 %v930_v40  ;;  %v1141_v40 = vld [vmem:[%s1864_s7] sm:$0xff] }
 0x21b   :  { %v905_v54 = vadd.f32 %v904_v53, %v832_v41  ;;  %v906_v55 = vpop.f32.mrb[47].mxu0  ;;  %1117 = vmatmul.mubr.bf16.gmra.mrb[24].mxu1 %v929_v38  ;;  %v921_v56 = vmax.f32 %v901_v49, 0.0 }
 0x21c   :  { %v907_v43 = vadd.f32 %v906_v55, %v834_v51  ;;  %v922_v44 = vmax.f32 %v903_v52, 0.0 }
 0x21d   :  { %v923_v15 = vmax.f32 %v905_v54, 0.0 }
 0x21e   :  { %v924_v57 = vmax.f32 %v907_v43, 0.0 }
 0x21f   :  { %v931_v58 = vpack.c.bf16 %v923_v15, %v921_v56 }
 0x220   :  { %v932_v59 = vpack.c.bf16 %v924_v57, %v922_v44 }
 0x222   :  { %1124 = vmatprep.mubr.bf16.mxu1 %v932_v59 }
 0x223   :  { %1125 = vmatmul.mubr.bf16.gmra.mrb[28].mxu1 %v931_v58 }
 0x224   :  { %1389 = vmatprep.mubr.msk.f32.mxu1 %vm1630_vm1, %v1631_v46 }
 0x2de   :  { %v1340_v47 = vpop.f32.mrb[16].mxu1 }
 0x2df   :  { %v1341_v60 = vpop.f32.mrb[17].mxu1 }
 0x2e0   :  { %v1342_v14 = vadd.f32 %v1341_v60, %v1340_v47  ;;  %v1343_v17 = vpop.f32.mrb[18].mxu1 }
 0x2e1   :  { %v1344_v61 = vpop.f32.mrb[19].mxu1 }
 0x2e2   :  { %v1103_v62 = vadd.f32 %v1342_v14, %v1307_v48  ;;  %v1345_v63 = vadd.f32 %v1344_v61, %v1343_v17 }
 0x2e4   :  { %v1106_v0 = vadd.f32 %v1345_v63, %v1307_v48  ;;  %v1133_v1 = vmax.f32 %v1103_v62, 0.0 }
 0x2e6   :  { %v1134_v2 = vmax.f32 %v1106_v0, 0.0  ;;  %v1346_v3 = vpop.f32.mrb[20].mxu1 }
 0x2e7   :  { %v1347_v4 = vpop.f32.mrb[21].mxu1 }
 0x2e8   :  { %v1393_v5 = vpack.c.bf16 %v1134_v2, %v1133_v1  ;;  %v1348_v6 = vadd.f32 %v1347_v4, %v1346_v3  ;;  %v1349_v7 = vpop.f32.mrb[22].mxu1 }
 0x2e9   :  { %v1350_v8 = vpop.f32.mrb[23].mxu1 }
 0x2ea   :  { %v1111_v9 = vadd.f32 %v1348_v6, %v1307_v48  ;;  %v1351_v11 = vadd.f32 %v1350_v8, %v1349_v7  ;;  %1394 = vmatpush3.bf16.xpose.msra.mxu1 %v1393_v5 }
 0x2eb   :  { %1395 = vmatprep.subr.bf16.mxu1 %v1629_v45 }
 0x2ec   :  { %v1114_v12 = vadd.f32 %v1351_v11, %v1307_v48  ;;  %v1135_v20 = vmax.f32 %v1111_v9, 0.0 }
 0x2ee   :  { %v1136_v10 = vmax.f32 %v1114_v12, 0.0  ;;  %v1352_v13 = vpop.f32.mrb[24].mxu1 }
 0x2ef   :  { %v1353_v21 = vpop.f32.mrb[25].mxu1 }
 0x2f0   :  { %v1396_v22 = vpack.c.bf16 %v1136_v10, %v1135_v20  ;;  %v1354_v23 = vadd.f32 %v1353_v21, %v1352_v13  ;;  %v1355_v24 = vpop.f32.mrb[26].mxu1 }
 0x2f1   :  { %v1356_v25 = vpop.f32.mrb[27].mxu1 }
 0x2f2   :  { %v1119_v26 = vadd.f32 %v1354_v23, %v1307_v48  ;;  %v1357_v18 = vadd.f32 %v1356_v25, %v1355_v24  ;;  %1397 = vmatpush3.bf16.xpose.msra.mxu1 %v1396_v22 }
 0x2f3   :  { %1398 = vmatprep.subr.bf16.mxu1 %v1629_v45 }
 0x2f4   :  { %v1122_v27 = vadd.f32 %v1357_v18, %v1307_v48  ;;  %v1137_v19 = vmax.f32 %v1119_v26, 0.0 }
 0x2f6   :  { %v1138_v28 = vmax.f32 %v1122_v27, 0.0  ;;  %v1358_v29 = vpop.f32.mrb[28].mxu1 }
 0x2f7   :  { %v1359_v30 = vpop.f32.mrb[29].mxu1 }
 0x2f8   :  { %v1399_v31 = vpack.c.bf16 %v1138_v28, %v1137_v19  ;;  %v1360_v32 = vadd.f32 %v1359_v30, %v1358_v29  ;;  %v1361_v33 = vpop.f32.mrb[30].mxu1 }
 0x2f9   :  { %v1362_v34 = vpop.f32.mrb[31].mxu1 }
 0x2fa   :  { %v1127_v16 = vadd.f32 %v1360_v32, %v1307_v48  ;;  %v1363_v35 = vadd.f32 %v1362_v34, %v1361_v33  ;;  %1400 = vmatpush3.bf16.xpose.msra.mxu1 %v1399_v31 }
 0x2fb   :  { %1401 = vmatprep.subr.bf16.mxu1 %v1629_v45 }
 0x2fc   :  { %v1130_v36 = vadd.f32 %v1363_v35, %v1307_v48  ;;  %v1139_v37 = vmax.f32 %v1127_v16, 0.0 }
 0x2fe   :  { %v1140_v38 = vmax.f32 %v1130_v36, 0.0 }
 0x300   :  { %v1402_v39 = vpack.c.bf16 %v1140_v38, %v1139_v37 }
 0x302   :  { %1403 = vmatpush3.bf16.xpose.msra.mxu1 %v1402_v39 }
 0x309   :  { %1390 = vmatmul.mubr.f32.vlgmr.msra.gmra.mrb[32].mxu1 %v1141_v40 }
 0x3dc   :  { %v1208_v41 = vpop.f32.mrb[32].mxu1 }
 0x3dd   :  { %v1214_v49 = vadd.f32 %v1213_v42, %v1208_v41  ;;  %v1391_v50 = vpop.f32.mrb[33].mxu1 }
 0x3df   :  { %1216 = vst.msk [vmem:[%s1866_s9] sm:$0x1] %vm1215_vm2, %v1214_v49 }
 0x3e0   :  { %1221 = vsyncpa [#allocation4], 1 }
 0x3e1   :  { %1222 = vsyncpa [#allocation6], 1 }

</bundles_post_ra>
